<compile_context>
chip_gen: v6e
topology: v6e:2x2x1
jax: 0.10.0
libtpu: 0.0.40
codegen_flags: <defaults>
</compile_context>

<pallas_src>
import jax
import jax.numpy as jnp
from jax.experimental import pallas as pl
from jax.experimental.pallas import tpu as pltpu

_LANES = 128
_SUBLANE_TILE = {4: 8, 2: 16, 1: 32}   # f32 / bf16 / int8-fp8 sublane tiling


def spatial_attention_kernel(w_ref, b_ref, x_ref, o_ref):
    # w_ref: VMEM (C, 1, 1) f32      b_ref: SMEM (1,) f32
    # x_ref/o_ref: VMEM (C, R_blk, 128) -- spatial is dense on sublanes x lanes.
    xf = x_ref[...].astype(jnp.float32)                       # (C, Rb, 128)
    # 1x1 conv == per-position channel dot: broadcast-mul + reduce over the
    # leading (untiled) C axis; stays on dense vregs (no sublane extracts).
    logits = jnp.sum(xf * w_ref[...], axis=0) + b_ref[0]      # (Rb, 128) f32
    # sigmoid(z) == 0.5 * tanh(0.5 * z) + 0.5 : a single EUP transcendental.
    att = 0.5 * jnp.tanh(0.5 * logits) + 0.5
    # Gate in f32 and cast once on the way out.
    o_ref[...] = (xf * att[None, :, :]).astype(o_ref.dtype)


def _ceil_div(a, b):
    return -(-a // b)


def _select_tiling(n, c, r, itemsize):
    """Pick rows-per-block (multiple of the dtype sublane tile) and a VMEM limit."""
    sub = _SUBLANE_TILE.get(itemsize, 8)

    try:
        vmem_cap = pltpu.get_tpu_info().vmem_capacity_bytes
    except Exception:                       # off-TPU tracing / older jax
        vmem_cap = 64 * 1024 * 1024         # assume the smallest (v7x per-TC)
    small_vmem = vmem_cap <= 64 * 1024 * 1024

    # Per-block VMEM cost ~= 4 * block_bytes (input + output, each double-buffered)
    #                       + ~2.5 * block_bytes_f32 (xf / product / att temps).
    # ~2 MiB blocks => ~13 MiB total (fits v7x's 64 MiB with headroom);
    # ~6 MiB blocks => ~38 MiB total (fine on 128 MiB v5e/v6e; amortizes the
    # ~0.35 us/step grid overhead).  The kernel is HBM-bound either way.
    target_block_bytes = (2 if small_vmem else 6) * 1024 * 1024

    r_blk = (target_block_bytes // (c * _LANES * itemsize)) // sub * sub
    r_blk = max(sub, r_blk)
    if r_blk >= r:
        r_blk = r                            # full extent: always a legal block

    # Megacore: if the batch axis cannot be sharded (n == 1), make sure the
    # spatial axis gets at least two blocks so both TensorCores have work.
    if n == 1 and r_blk >= r and r > sub:
        r_blk = _ceil_div(_ceil_div(r, 2), sub) * sub    # < r because r > sub

    vmem_limit = (40 if small_vmem else 64) * 1024 * 1024
    return r_blk, vmem_limit


def spatial_attention(x_nchw, weight, bias):
    """x_nchw: (N, C, H, W); weight: (1, C, 1, 1); bias: (1,).

    Equivalent to PyTorch: x * sigmoid(Conv2d(C, 1, kernel_size=1)(x)).
    """
    N, C, H, W = x_nchw.shape
    HW = H * W
    itemsize = jnp.dtype(x_nchw.dtype).itemsize

    hw_pad = _ceil_div(HW, _LANES) * _LANES
    R = hw_pad // _LANES

    x3 = x_nchw.reshape(N, C, HW)                  # free reshape, no transpose
    if hw_pad != HW:
        # Zero padding is safe: padded outputs are sliced off below.
        x3 = jnp.pad(x3, ((0, 0), (0, 0), (0, hw_pad - HW)))
    x4 = x3.reshape(N, C, R, _LANES)               # spatial -> (sublane, lane)

    w = weight.reshape(C, 1, 1).astype(jnp.float32)    # tiny VMEM constant
    b = bias.reshape(1).astype(jnp.float32)            # SMEM scalar

    r_blk, vmem_limit = _select_tiling(N, C, R, itemsize)
    grid = (N, pl.cdiv(R, r_blk))

    # NOTE: for wide channel counts (C >~ 16) the reduction could be routed
    # through the otherwise-idle MXU (jnp.dot(w.reshape(1, C), ...)); for the
    # small C typical of this gate the dense VPU chain is cheaper.
    out4 = pl.pallas_call(
        spatial_attention_kernel,
        out_shape=jax.ShapeDtypeStruct((N, C, R, _LANES), x4.dtype),
        grid=grid,
        in_specs=[
            pl.BlockSpec((C, 1, 1), lambda n, s: (0, 0, 0)),            # weight
            pl.BlockSpec(memory_space=pltpu.MemorySpace.SMEM),          # bias
            pl.BlockSpec((None, C, r_blk, _LANES), lambda n, s: (n, 0, s, 0)),
        ],
        out_specs=pl.BlockSpec((None, C, r_blk, _LANES), lambda n, s: (n, 0, s, 0)),
        compiler_params=pltpu.CompilerParams(
            dimension_semantics=("parallel", "parallel"),
            vmem_limit_bytes=vmem_limit,
        ),
    )(w, b, x4)

    out3 = out4.reshape(N, C, hw_pad)
    if hw_pad != HW:
        out3 = out3[:, :, :HW]
    return out3.reshape(N, C, H, W)


def spatial_attention_ref(x_nchw, weight, bias):
    # Pure-JAX reference matching the PyTorch module (1x1 conv = channel dot).
    att = jnp.einsum("nchw,c->nhw", x_nchw, weight.reshape(-1)) + bias[0]
    att = jax.nn.sigmoid(att)[:, None, :, :]
    return x_nchw * att


if __name__ == "__main__":
    key = jax.random.PRNGKey(0)
    kx, kw, kb = jax.random.split(key, 3)

    N, C, H, W = 2, 4, 16, 16
    x = jax.random.normal(kx, (N, C, H, W), dtype=jnp.float32)
    # Deterministic "Conv2d(in_channels, 1, kernel_size=1)" parameters.
    weight = jax.random.normal(kw, (1, C, 1, 1), dtype=jnp.float32) * 0.5
    bias = jax.random.normal(kb, (1,), dtype=jnp.float32) * 0.1

    out = jax.block_until_ready(spatial_attention(x, weight, bias))

    ref = spatial_attention_ref(x, weight, bias)
    assert out.shape == (N, C, H, W)
    assert jnp.allclose(out, ref, atol=1e-5, rtol=1e-5)

    print("KERNEL_OK")
</pallas_src>

<mosaic_0001>
module attributes {stable_mosaic.version = 11 : i64} {
  func.func @spatial_attention_kernel(%arg0: i32, %arg1: i32, %arg2: memref<4x1x1xf32, #tpu.memory_space<vmem>>, %arg3: memref<1xf32, #tpu.memory_space<smem>>, %arg4: memref<1x4x2x128xf32, #tpu.memory_space<vmem>>, %arg5: memref<1x4x2x128xf32, #tpu.memory_space<vmem>>) attributes {dimension_semantics = [#tpu.dimension_semantics<parallel>, #tpu.dimension_semantics<parallel>], iteration_bounds = array<i64: 2, 1>, scalar_prefetch = 0 : i64, scratch_operands = 0 : i64, tpu.core_type = #tpu.core_type<tc>, window_params = [{pipeline_mode = #tpu.pipeline_mode<synchronous>, transform_indices = @transform_0, window_bounds = array<i64: 4, 1, 1>}, {transform_indices = @transform_1, window_bounds = array<i64: 1>}, {transform_indices = @transform_2, window_bounds = array<i64: 1, 4, 2, 128>}, {transform_indices = @transform_3, window_bounds = array<i64: 1, 4, 2, 128>}]} {
    %c0 = arith.constant 0 : index
    %c0_0 = arith.constant 0 : index
    %c0_1 = arith.constant 0 : index
    %c0_2 = arith.constant 0 : index
    %0 = vector.load %arg4[%c0, %c0_0, %c0_1, %c0_2] : memref<1x4x2x128xf32, #tpu.memory_space<vmem>>, vector<1x4x2x128xf32>
    %1 = vector.shape_cast %0 : vector<1x4x2x128xf32> to vector<4x2x128xf32>
    %c0_3 = arith.constant 0 : index
    %c0_4 = arith.constant 0 : index
    %c0_5 = arith.constant 0 : index
    %2 = vector.load %arg2[%c0_3, %c0_4, %c0_5] : memref<4x1x1xf32, #tpu.memory_space<vmem>>, vector<4x1x1xf32>
    %3 = vector.broadcast %2 : vector<4x1x1xf32> to vector<4x2x128xf32>
    %4 = arith.mulf %1, %3 : vector<4x2x128xf32>
    %cst = arith.constant dense<0.000000e+00> : vector<2x128xf32>
    %5 = vector.multi_reduction <add>, %4, %cst [0] : vector<4x2x128xf32> to vector<2x128xf32>
    %c0_6 = arith.constant 0 : index
    %6 = memref.load %arg3[%c0_6] : memref<1xf32, #tpu.memory_space<smem>>
    %7 = vector.broadcast %6 : f32 to vector<2x128xf32>
    %8 = arith.addf %5, %7 : vector<2x128xf32>
    %cst_7 = arith.constant 5.000000e-01 : f32
    %9 = vector.broadcast %cst_7 : f32 to vector<2x128xf32>
    %10 = arith.mulf %9, %8 : vector<2x128xf32>
    %11 = math.tanh %10 : vector<2x128xf32>
    %cst_8 = arith.constant 5.000000e-01 : f32
    %12 = vector.broadcast %cst_8 : f32 to vector<2x128xf32>
    %13 = arith.mulf %12, %11 : vector<2x128xf32>
    %cst_9 = arith.constant 5.000000e-01 : f32
    %14 = vector.broadcast %cst_9 : f32 to vector<2x128xf32>
    %15 = arith.addf %13, %14 : vector<2x128xf32>
    %16 = vector.shape_cast %15 : vector<2x128xf32> to vector<1x2x128xf32>
    %17 = vector.broadcast %16 : vector<1x2x128xf32> to vector<4x2x128xf32>
    %18 = arith.mulf %1, %17 : vector<4x2x128xf32>
    %c0_10 = arith.constant 0 : index
    %c0_11 = arith.constant 0 : index
    %c0_12 = arith.constant 0 : index
    %c0_13 = arith.constant 0 : index
    %19 = vector.load %arg5[%c0_10, %c0_11, %c0_12, %c0_13] : memref<1x4x2x128xf32, #tpu.memory_space<vmem>>, vector<1x4x2x128xf32>
    %20 = vector.shape_cast %19 : vector<1x4x2x128xf32> to vector<4x2x128xf32>
    %21 = vector.shape_cast %18 : vector<4x2x128xf32> to vector<1x4x2x128xf32>
    tpu.vector_store %arg5[%c0_10, %c0_11, %c0_12, %c0_13], %21 {strides = array<i32>} : memref<1x4x2x128xf32, #tpu.memory_space<vmem>>, vector<1x4x2x128xf32>,
    return
  }
  func.func @transform_0(%arg0: i32, %arg1: i32) -> (i32, i32, i32) {
    %c0_i32 = arith.constant 0 : i32
    %c0_i32_0 = arith.constant 0 : i32
    %c0_i32_1 = arith.constant 0 : i32
    %c0_i32_2 = arith.constant 0 : i32
    return %c0_i32, %c0_i32_0, %c0_i32_1 : i32, i32, i32
  }
  func.func @transform_1(%arg0: i32, %arg1: i32) -> i32 {
    %c0_i32 = arith.constant 0 : i32
    %c0_i32_0 = arith.constant 0 : i32
    return %c0_i32 : i32
  }
  func.func @transform_2(%arg0: i32, %arg1: i32) -> (i32, i32, i32, i32) {
    %c0_i32 = arith.constant 0 : i32
    %c0_i32_0 = arith.constant 0 : i32
    %c0_i32_1 = arith.constant 0 : i32
    return %arg0, %c0_i32, %arg1, %c0_i32_0 : i32, i32, i32, i32
  }
  func.func @transform_3(%arg0: i32, %arg1: i32) -> (i32, i32, i32, i32) {
    %c0_i32 = arith.constant 0 : i32
    %c0_i32_0 = arith.constant 0 : i32
    %c0_i32_1 = arith.constant 0 : i32
    return %arg0, %c0_i32, %arg1, %c0_i32_0 : i32, i32, i32, i32
  }
}

</mosaic_0001>

<bundles_post_ra>
// kernel: tpu_custom_call.1
= control target key start
LH: loop header
LB: loop body
LE: loop exit
PB: predicated region body
PF: predicated region fallthrough
CT: control target
= control target key end

     0   :  { %s772_s0 = inlined_call_operand.vmem [shape: f32[4,1,1], index: 0, kind: input, shape index: {}]   ;;  %s773_s1 = inlined_call_operand.<no memory space> [shape: f32[1], index: 1, kind: input, shape index: {}]   ;;  %s774_s2 = inlined_call_operand.hbm [shape: f32[2,4,2,128], index: 2, kind: input, shape index: {}]   ;;  %s775_s3 = inlined_call_operand.hbm [shape: f32[2,4,2,128], index: 3, kind: output, shape index: {}]  }
   0x1   :  { %8 = sst [smem:[#allocation2]] %s773_s1 }
   0x2   :  { %9 = vsyncpa [#allocation4], 0 }
   0x3   :  { %11 = vsyncpa [#allocation4 + $0x1], 0 }
   0x4   :  { %12 = vsyncpa [#allocation5], 0 }
   0x5   :  { %14 = vsyncpa [#allocation5 + $0x1], 0  ;;  %s610_s14 = smov 0   ;;  %s612_s15 = smov 0  }
   0x6   :  { %s614_s16 = smov 0   ;;  %s616_s17 = smov 0  }
   0x7   :  { %s618_s18 = smov 0   ;;  %s620_s19 = smov 0  }
   0x8 LB: > { %s378_s1 = sadd.s32 4294967295, %s578_s19   ;;  %s379_s20 = sadd.s32 4294967294, %s578_s19   ;;  %s578_s19 = sphi %s620_s19, %s20_s19   ;;  %s574_s18 = sphi %s618_s18, %s786_s18   ;;  %s570_s17 = sphi %s616_s17, %s785_s17   ;;  %s566_s16 = sphi %s614_s16, %s784_s16   ;;  %s562_s15 = sphi %s612_s15, %s783_s15   ;;  %s558_s14 = sphi %s610_s14, %s782_s14  }
   0x9   : > { %s32_s21 = sadd.s32 1, %s574_s18  ;;  %s83_s22 = sadd.s32 1, %s566_s16 }
   0xa   : > { %p34_p0 = scmp.ge.s32.totalorder %s32_s21, 2  ;;  %p90_p1 = scmp.ne.s32.totalorder %s566_s16, %s562_s15 }
   0xb   : > { %p91_p2 = scmp.eq.s32.totalorder %s578_s19, 0  ;;  %p96_p3 = scmp.ne.s32.totalorder %s562_s15, %s558_s14 }
   0xc   : > { %s788_s21 = smov (%p34_p0, %s32_s21), 0  ;;  %p97_p5 = scmp.eq.s32.totalorder %s378_s1, 0 }
   0xd   : > { %p651_p4 = por %p91_p2, %p90_p1  ;;  %s78_s24 = ssub.s32 %s574_s18, %s788_s21 }
   0xe   : > { %p122_p6 = scmp.eq.s32.totalorder %s378_s1, 1  ;;  %p81_p7 = scmp.eq.s32.totalorder %s78_s24, 0 }
   0xf   : > { %p657_p8 = por %p97_p5, %p96_p3  ;;  %p128_p10 = scmp.eq.s32.totalorder %s379_s20, 1 }
  0x10   : > { %p661_p9 = por %p122_p6, %p90_p1  ;;  %p411_p13 = scmp.lt.s32.totalorder %s578_s19, 2 }
  0x11   : > { %s666_s27 = scalar_select %p81_p7, %s566_s16, %s83_s22  }
  0x12   : > { %p668_p11 = por %p128_p10, %p96_p3  ;;  %s154_s29 = sand.u32 1, %s566_s16  }
  0x13   : > { %s382_s30 = sshll.u32 %s154_s29, 3  ;;  %s397_s4 = sshll.u32 %s574_s18, 7 }
  0x14   : > { %s165_s7 = scalar_lea.hbm %s774_s2, %s397_s4  ;;  %s158_s8 = scalar_lea.vmem [#allocation3], %s382_s30 }
  0x15   : > { %s166_s9 = sshll.u32 %s158_s8, 4  ;;  %p681_p0 = pnand %p411_p13, %p651_p4  ;;  %s167_s9 = int_to_ptr.vmem [resolvable:$true] %s166_s9 }
  0x16   : > { %p385_p1 = scmp.ge.s32.totalorder %s578_s19, 1  ;;  %s155_s11 = scalar_lea.sflag [#allocation4], %s154_s29 }
  0x17   : > { %p472_p2 = pneg %p681_p0  ;;  %s483_s12 = scalar_lea.vmem %s167_s9, 128 }
  0x18   : > { %p484_p3 = scmp.ne.s32.totalorder %s167_s9, %s483_s12  ;;  %s580_s13 = smov [#allocation3]  }
  0x19   : > { %s488_s1 = sshll.u32 %s580_s13, 4  ;;  %s489_s1 = int_to_ptr.vmem [resolvable:$false] %s488_s1 }
  0x1a   : > { %p486_p5 = pnand %p484_p3, %p472_p2  ;;  %s490_s20 = scalar_lea.vmem %s489_s1, 256 }
  0x1b   : > { %p491_p7 = scmp.lt.s32.totalorder %s167_s9, %s489_s1  ;;  %p492_p10 = scmp.lt.s32.totalorder %s490_s20, %s483_s12 }
  0x1c   : > { %p487_p6 = pneg %p486_p5 }
  0x1d   : > { %p493_p12 = por %p492_p10, %p491_p7 }
  0x1f   : > { %p494_p4 = pnand %p493_p12, %p487_p6 }
  0x21   : > { %497 = shalt.err (!%p494_p4)
}
  0x22   : > { %s581_s22 = smov 32   ;;  %s582_s23 = smov 2  }
  0x23   : > { %406 = dma.hbm_to_vmem [thread:$0]  (!%p681_p0), %s165_s7, 128, %s167_s9, %s155_s11, %s581_s22, %s581_s22, %s582_s23  }
  0x24   : > { %p174_p13 = scmp.lt.s32.totalorder %s578_s19, 3 }
  0x26   : > { %p175_p2 = pnand %p385_p1, %p174_p13 }
  0x27   : > { %s694_s24 = sand.u32 (!%p175_p2), 1, %s562_s15  }
  0x28   : > { %178 = sbr.rel (%p175_p2) target bundleno = 224 (0xe0), region = 32  ;;  %s386_s29 = sshll.u32 (!%p175_p2), %s694_s24, 3 }
  0x29   : > { %s181_s30 = scalar_lea.sflag (!%p175_p2), [#allocation4], %s694_s24  ;;  %s184_s4 = scalar_lea.vmem (!%p175_p2), [#allocation3], %s386_s29 }
  0x2d   : > { %549 = dma.done.wait (%p657_p8), %s181_s30, 128  }
  0x2e   : > { %551 = vsyncadd (%p657_p8), %s181_s30, 4294967168  ;;  %v583_v0 = vmov 0   ;;  %v390_v1 = vld [vmem:[%s772_s0 + $0x2] ss:$0 sm:$0xff]  ;;  %v388_v2 = vld [vmem:[%s772_s0] ss:$0 sm:$0xff] }
  0x2f   : > { %467 = vset.pattern.permute.xlu1 %v583_v0  ;;  %466 = vset.pattern.permute.xlu0 %v583_v0  ;;  %v391_v3 = vld [vmem:[%s772_s0 + $0x3] ss:$0 sm:$0xff]  ;;  %v389_v4 = vld [vmem:[%s772_s0 + $0x1] ss:$0 sm:$0xff]  ;;  %v209_v8 = vld [vmem:[%s184_s4 + $0x4] sm:$0x3] }
  0x30   : > { %244 = vperm.xlu1 %467, %v390_v1   ;;  %236 = vperm.xlu0 %466, %v388_v2   ;;  %v207_v7 = vld [vmem:[%s184_s4] sm:$0x3]  ;;  %v208_v9 = vld [vmem:[%s184_s4 + $0x2] sm:$0x3]  ;;  %s263_s12 = sld [smem:[#allocation2]]  ;;  %vm255_vm0 = vcmask 1041408  }
  0x31   : > { %v210_v12 = vld [vmem:[%s184_s4 + $0x6] sm:$0x3]  ;;  %s206_s13 = scalar_lea.vmem [#allocation6], %s386_s29  ;;  %s398_s20 = sshll.u32 %s570_s17, 7 }
  0x32   : > { %s293_s1 = sshll.u32 %s206_s13, 4  ;;  %s724_s30 = scalar_lea.hbm %s775_s3, %s398_s20  ;;  %s719_s1 = int_to_ptr.vmem [resolvable:$true] %s293_s1 }
  0x33   : > { %s279_s17 = scalar_lea.sflag [#allocation5], %s694_s24  ;;  %s498_s29 = scalar_lea.vmem %s719_s1, 128 }
  0x34   : > { %248 = vperm.xlu1 %467, %v391_v3   ;;  %240 = vperm.xlu0 %466, %v389_v4   ;;  %p499_p8 = scmp.ne.s32.totalorder %s719_s1, %s498_s29  ;;  %s584_s4 = smov [#allocation6]  }
  0x35   : > { %s502_s5 = sshll.u32 %s584_s4, 4  ;;  %s503_s5 = int_to_ptr.vmem [resolvable:$false] %s502_s5 }
  0x36   : > { %v264_v23 = vstv %s263_s12  ;;  %p500_p12 = pnand %p499_p8, %p661_p9  ;;  %s504_s6 = scalar_lea.vmem %s503_s5, 256 }
  0x37   : > { %p505_p1 = scmp.lt.s32.totalorder %s719_s1, %s503_s5  ;;  %p506_p3 = scmp.lt.s32.totalorder %s504_s6, %s498_s29 }
  0x38   : > { %p501_p0 = pneg %p500_p12 }
  0x39   : > { %p507_p5 = por %p506_p3, %p505_p1 }
  0x3b   : > { %p508_p6 = pnand %p507_p5, %p501_p0 }
  0xab   : > { %v245_v5 = vpop.permute.xlu1 %244  ;;  %v237_v6 = vpop.permute.xlu0 %236 }
  0xac   : > { %v251_v10 = vmul.f32 %v237_v6, %v207_v7  ;;  %v253_v14 = vmul.f32 %v245_v5, %v209_v8 }
  0xae   : > { %v256_v16 = vsel %vm255_vm0, %v251_v10, 0.0  ;;  %v259_v20 = vsel %vm255_vm0, %v253_v14, 0.0 }
  0xaf   : > { %v249_v11 = vpop.permute.xlu1 %248  ;;  %v241_v13 = vpop.permute.xlu0 %240 }
  0xb0   : > { %v252_v15 = vmul.f32 %v241_v13, %v208_v9  ;;  %v254_v17 = vmul.f32 %v249_v11, %v210_v12 }
  0xb2   : > { %v257_v18 = vsel %vm255_vm0, %v252_v15, 0.0  ;;  %v261_v22 = vsel %vm255_vm0, %v254_v17, 0.0 }
  0xb3   : > { %v258_v19 = vadd.f32 %v257_v18, %v256_v16 }
  0xb5   : > { %v260_v21 = vadd.f32 %v259_v20, %v258_v19 }
  0xb7   : > { %v262_v24 = vadd.f32 %v261_v22, %v260_v21 }
  0xb9   : > { %v265_v25 = vadd.f32 %v264_v23, %v262_v24 }
  0xbb   : > { %v266_v26 = vmul.f32 0.5, %v265_v25 }
  0xbd   : > { %468 = vtanh.f32 %v266_v26 }
  0xca   : > { %v469_v27 = vpop.eup %468 }
  0xcb   : > { %v268_v28 = vmul.f32 0.5, %v469_v27 }
  0xcd   : > { %v269_v29 = vadd.f32 0.5, %v268_v28 }
  0xcf   : > { %v270_v30 = vmul.f32 %v269_v29, %v207_v7  ;;  %v271_v31 = vmul.f32 %v269_v29, %v208_v9  ;;  %v272_v32 = vmul.f32 %v269_v29, %v209_v8  ;;  %v273_v33 = vmul.f32 %v269_v29, %v210_v12 }
  0xd1   : > { %274 = vst [vmem:[%s206_s13] sm:$0x3] %v270_v30  ;;  %275 = vst [vmem:[%s206_s13 + $0x2] sm:$0x3] %v271_v31 }
  0xd2   : > { %276 = vst [vmem:[%s206_s13 + $0x4] sm:$0x3] %v272_v32  ;;  %277 = vst [vmem:[%s206_s13 + $0x6] sm:$0x3] %v273_v33 }
  0xd3   : > { %511 = shalt.err (!%p508_p6)
}
  0xd4   : > { %s512_s7 = scalar_lea.hbm %s724_s30, 128  ;;  %s516_s10 = scalar_lea.hbm %s775_s3, 256 }
  0xd5   : > { %p513_p7 = scmp.ne.s32.totalorder %s724_s30, %s512_s7  ;;  %p517_p13 = scmp.lt.s32.totalorder %s724_s30, %s775_s3 }
  0xd6   : > { %p518_p2 = scmp.lt.s32.totalorder %s516_s10, %s512_s7 }
  0xd7   : > { %p514_p10 = pnand %p513_p7, %p661_p9 }
  0xd8   : > { %p519_p8 = por %p518_p2, %p517_p13 }
  0xd9   : > { %p515_p4 = pneg %p514_p10 }
  0xdb   : > { %p520_p12 = pnand %p519_p8, %p515_p4 }
  0xdd   : > { %523 = shalt.err (!%p520_p12)
}
  0xde   : > { %s585_s12 = smov 32   ;;  %s586_s13 = smov 2  }
  0xdf   : > { %401 = dma.vmem_to_hbm [thread:$0]  (%p661_p9), %s719_s1, 128, %s724_s30, %s279_s17, %s585_s12, %s585_s12, %s586_s13  }
  0xe0 PF: > { %s308_s20 = sand.u32 1, %s558_s14   ;;  %p781_p0 = scmp.ge.s32.totalorder %s578_s19, 2 }
  0xe1   : > { %s309_s22 = scalar_lea.sflag [#allocation5], %s308_s20 }
  0xe2   : > { %p408_p1 = pnand %p781_p0, %p668_p11 }
  0xe4   : > { %p409_p3 = pneg %p408_p1 }
  0xe6   : > { %553 = dma.done.wait (%p409_p3), %s309_s22, 128  }
  0xe7   : > { %555 = vsyncadd (%p409_p3), %s309_s22, 4294967168  ;;  %s20_s19 = sadd.s32 1, %s578_s19   ;;  %s782_s14 = smov %s562_s15 }
  0xe8   : > { %p17_p5 = scmp.ge.s32.totalorder %s20_s19, 4   ;;  %s783_s15 = smov %s566_s16 }
  0xe9   : > { %s784_s16 = smov %s666_s27  ;;  %s785_s17 = smov %s574_s18 }
  0xea   : > { %s786_s18 = smov %s788_s21  ;;  %19 = sbr.rel (!%p17_p5) target bundleno = 8 (0x8), region = 77 }
  0xef   :  { %314 = vsyncpa [#allocation4], 1 }
  0xf0   :  { %316 = vsyncpa [#allocation4 + $0x1], 1 }
  0xf1   :  { %317 = vsyncpa [#allocation5], 1 }
  0xf2   :  { %319 = vsyncpa [#allocation5 + $0x1], 1 }

</bundles_post_ra>
